<compile_context>
chip_gen: v5e
topology: v5e:2x2
jax: 0.10.0
libtpu: 0.0.40
codegen_flags: <defaults>
</compile_context>

<pallas_src>
import functools

import jax
import jax.numpy as jnp
from jax.experimental import pallas as pl
from jax.experimental.pallas import tpu as pltpu


def _locked_dropout_kernel(x_ref, m_ref, o_ref, *, inv_keep: float):
    # mask is already 0/1 in x's dtype; apply the inverted-dropout scale here.
    o_ref[...] = (x_ref[...] * m_ref[...]) * inv_keep


def _lane_dense_2d(a):
    """Reshape to 2-D with a lane-dense (multiple-of-128) last dim if possible."""
    h = a.shape[-1]
    total = a.size
    if h % 128 == 0:
        return a.reshape(-1, h)
    if total % 128 == 0:
        return a.reshape(-1, 128)
    # Fallback: last dim equals the (small) hidden dim; correct but uses
    # masked partial stores.
    return a.reshape(-1, h)


def _tile_rows(rows, cols, itemsize, target_bytes=1 << 20):
    """Row tile so each operand block is ~1 MiB: 3 operands x 2 pipeline
    buffers stays well under the scoped-VMEM default on v5e/v6e/v7x."""
    tr = target_bytes // max(1, cols * itemsize)
    if tr >= rows:
        return rows                      # single full block (shape == array)
    return max(8, (tr // 8) * 8)         # multiple of 8 for the sublane rule


def locked_dropout_apply(x, mask, dropout: float):
    keep_prob = 1.0 - float(dropout)
    if keep_prob <= 0.0:
        raise ValueError("LockedDropout requires dropout < 1.0")
    inv_keep = 1.0 / keep_prob

    x2 = _lane_dense_2d(x)
    m2 = _lane_dense_2d(mask)
    rows, cols = x2.shape
    itemsize = x2.dtype.itemsize
    tr = _tile_rows(rows, cols, itemsize)

    out2 = pl.pallas_call(
        functools.partial(_locked_dropout_kernel, inv_keep=inv_keep),
        out_shape=jax.ShapeDtypeStruct((rows, cols), x2.dtype),
        grid=(pl.cdiv(rows, tr),),
        in_specs=[
            pl.BlockSpec((tr, cols), lambda i: (i, 0)),   # x row-tile
            pl.BlockSpec((tr, cols), lambda i: (i, 0)),   # mask row-tile
        ],
        out_specs=pl.BlockSpec((tr, cols), lambda i: (i, 0)),
        compiler_params=pltpu.CompilerParams(
            dimension_semantics=("parallel",)),
        cost_estimate=pl.CostEstimate(
            flops=2 * rows * cols,
            transcendentals=0,
            bytes_accessed=3 * rows * cols * itemsize),
    )(x2, m2)

    return out2.reshape(x.shape)


class LockedDropout:
    """JAX/Pallas port of the PyTorch LockedDropout module."""

    def __init__(self, key=None):
        # Cache the mask tensor itself, exactly like PyTorch's self.m.
        self.m = None
        self._key = key if key is not None else jax.random.PRNGKey(1234)

    def reset_state(self):
        self.m = None

    def __call__(self, x, dropout: float = 0.5, train: bool = True):
        if not train:
            return x
        if self.m is None:
            keep_prob = 1.0 - float(dropout)
            # Reference draws a full x.size() Bernoulli(1 - dropout) mask.
            self.m = jax.random.bernoulli(
                self._key, p=keep_prob, shape=x.shape).astype(x.dtype)
        return locked_dropout_apply(x, self.m, dropout)


if __name__ == "__main__":
    key = jax.random.PRNGKey(0)
    # (seq, batch, hidden) -- what an RNN forward feeds this module.
    x = jax.random.normal(key, (8, 2, 32), dtype=jnp.float32)

    ld = LockedDropout()

    # Train mode: first call draws the mask, second call must reuse it.
    y1 = ld(x, dropout=0.5, train=True)
    y2 = ld(x, dropout=0.5, train=True)
    jax.block_until_ready(y1)
    jax.block_until_ready(y2)

    assert y1.shape == x.shape and y1.dtype == x.dtype
    # Locked mask: identical output across calls with the same input.
    assert bool(jnp.array_equal(y1, y2)), "locked mask was not reused"
    # Dropout structure: every output element is either 0 or 2*x (p=0.5 scale).
    zero_or_scaled = jnp.logical_or(
        jnp.isclose(y1, 0.0), jnp.isclose(y1, 2.0 * x, atol=1e-6))
    assert bool(jnp.all(zero_or_scaled)), "output is not {0, x/(1-p)}-valued"
    # Cross-check against the plain-JAX reference computation.
    ref = (ld.m / 0.5) * x
    assert bool(jnp.allclose(y1, ref, atol=1e-6)), "mismatch vs reference"

    # Eval mode: identity.
    y_eval = ld(x, dropout=0.5, train=False)
    jax.block_until_ready(y_eval)
    assert bool(jnp.array_equal(y_eval, x))

    print("KERNEL_OK")
</pallas_src>

<mosaic_0001>
module attributes {stable_mosaic.version = 11 : i64} {
  func.func @_locked_dropout_kernel(%arg0: i32, %arg1: memref<4x128xf32, #tpu.memory_space<vmem>>, %arg2: memref<4x128xf32, #tpu.memory_space<vmem>>, %arg3: memref<4x128xf32, #tpu.memory_space<vmem>>) attributes {dimension_semantics = [#tpu.dimension_semantics<parallel>], iteration_bounds = array<i64: 1>, scalar_prefetch = 0 : i64, scratch_operands = 0 : i64, tpu.core_type = #tpu.core_type<tc>, window_params = [{transform_indices = @transform_0, window_bounds = array<i64: 4, 128>}, {transform_indices = @transform_1, window_bounds = array<i64: 4, 128>}, {transform_indices = @transform_2, window_bounds = array<i64: 4, 128>}]} {
    %c0 = arith.constant 0 : index
    %c0_0 = arith.constant 0 : index
    %0 = vector.load %arg1[%c0, %c0_0] : memref<4x128xf32, #tpu.memory_space<vmem>>, vector<4x128xf32>
    %c0_1 = arith.constant 0 : index
    %c0_2 = arith.constant 0 : index
    %1 = vector.load %arg2[%c0_1, %c0_2] : memref<4x128xf32, #tpu.memory_space<vmem>>, vector<4x128xf32>
    %2 = arith.mulf %0, %1 : vector<4x128xf32>
    %cst = arith.constant 2.000000e+00 : f32
    %3 = vector.broadcast %cst : f32 to vector<4x128xf32>
    %4 = arith.mulf %2, %3 : vector<4x128xf32>
    %c0_3 = arith.constant 0 : index
    %c0_4 = arith.constant 0 : index
    %5 = vector.load %arg3[%c0_3, %c0_4] : memref<4x128xf32, #tpu.memory_space<vmem>>, vector<4x128xf32>
    tpu.vector_store %arg3[%c0_3, %c0_4], %4 {strides = array<i32>} : memref<4x128xf32, #tpu.memory_space<vmem>>, vector<4x128xf32>,
    return
  }
  func.func @transform_0(%arg0: i32) -> (i32, i32) {
    %c0_i32 = arith.constant 0 : i32
    %c0_i32_0 = arith.constant 0 : i32
    return %arg0, %c0_i32 : i32, i32
  }
  func.func @transform_1(%arg0: i32) -> (i32, i32) {
    %c0_i32 = arith.constant 0 : i32
    %c0_i32_0 = arith.constant 0 : i32
    return %arg0, %c0_i32 : i32, i32
  }
  func.func @transform_2(%arg0: i32) -> (i32, i32) {
    %c0_i32 = arith.constant 0 : i32
    %c0_i32_0 = arith.constant 0 : i32
    return %arg0, %c0_i32 : i32, i32
  }
}

</mosaic_0001>

<bundles_post_ra>
// kernel: tpu_custom_call.1
= control target key start
LH: loop header
LB: loop body
LE: loop exit
PB: predicated region body
PF: predicated region fallthrough
CT: control target
= control target key end

     0   :  { %7 = vsyncpa [#allocation3], 0  ;;  %s171_s0 = inlined_call_operand.hbm [shape: f32[4,128], index: 0, kind: input, shape index: {}]   ;;  %s172_s1 = inlined_call_operand.hbm [shape: f32[4,128], index: 1, kind: input, shape index: {}]   ;;  %s173_s2 = inlined_call_operand.hbm [shape: f32[4,128], index: 2, kind: output, shape index: {}]  }
   0x1   :  { %8 = vsyncpa [#allocation6], 0 }
   0x2   :  { %9 = vsyncpa [#allocation4], 0  ;;  %s15_s11 = sshll.u32 %s171_s0, 4  ;;  %s144_s12 = smov [#allocation2]   ;;  %s16_s11 = int_to_ptr.hbm [resolvable:$true] %s15_s11 }
   0x3   :  { %s17_s13 = sshll.u32 %s144_s12, 4  ;;  %s26_s16 = sshll.u32 %s172_s1, 4  ;;  %s18_s13 = int_to_ptr.vmem [resolvable:$true] %s17_s13  ;;  %s27_s16 = int_to_ptr.hbm [resolvable:$true] %s26_s16 }
   0x4   :  { %20 = dma.hbm_to_vmem [thread:$0]  %s16_s11, 64, %s18_s13, [#allocation3]  }
   0x5   :  { %s145_s17 = smov [#allocation5]  }
   0x6   :  { %s28_s18 = sshll.u32 %s145_s17, 4  ;;  %s29_s18 = int_to_ptr.vmem [resolvable:$true] %s28_s18 }
   0x7   :  { %31 = dma.hbm_to_vmem [thread:$0]  %s27_s16, 64, %s29_s18, [#allocation6]  }
   0x8   :  { %138 = dma.done.wait [#allocation3], 64  }
   0x9   :  { %139 = vsyncadd [#allocation3], 4294967232 }
   0xa   :  { %140 = dma.done.wait [#allocation6], 64  }
   0xb   :  { %141 = vsyncadd [#allocation6], 4294967232  ;;  %v40_v0 = vld [vmem:[#allocation2] sm:$0xf]  ;;  %v41_v1 = vld [vmem:[#allocation5] sm:$0xf] }
   0xc   :  { %s146_s0 = smov [#allocation7]   ;;  %s52_s22 = sshll.u32 %s173_s2, 4  ;;  %v42_v2 = vmul.f32 %v41_v1, %v40_v0  ;;  %s53_s22 = int_to_ptr.hbm [resolvable:$true] %s52_s22 }
   0xd   :  { %s50_s19 = sshll.u32 %s146_s0, 4  ;;  %s51_s19 = int_to_ptr.vmem [resolvable:$true] %s50_s19 }
   0xe   :  { %v43_v3 = vmul.f32 2.0, %v42_v2 }
  0x10   :  { %44 = vst [vmem:[#allocation7] sm:$0xf] %v43_v3 }
  0x11   :  { %55 = dma.vmem_to_hbm [thread:$0]  %s51_s19, 64, %s53_s22, [#allocation4]  }
  0x12   :  { %142 = dma.done.wait [#allocation4], 64  }
  0x13   :  { %143 = vsyncadd [#allocation4], 4294967232 }
  0x14   :  { %60 = vsyncpa [#allocation3], 1 }
  0x15   :  { %61 = vsyncpa [#allocation6], 1 }
  0x16   :  { %62 = vsyncpa [#allocation4], 1 }

</bundles_post_ra>
